<compile_context>
chip_gen: v6e
topology: v6e:2x2x1
jax: 0.10.0
libtpu: 0.0.40
codegen_flags: <defaults>
</compile_context>

<pallas_src>
import jax
import jax.numpy as jnp
from jax.experimental import pallas as pl
from jax.experimental.pallas import tpu as pltpu  # noqa: F401  (kept for TPU-target clarity)


def _noop_alias_kernel(kf_in, fr_in, kf_out, fr_out):
    """No-op body: outputs alias inputs (input_output_aliases), so the data is
    already sitting in the output buffers; nothing is read or written here."""
    # Intentionally empty -- zero VMEM, zero DMA, zero vreg / MXU / VPU work.
    del kf_in, fr_in, kf_out, fr_out


def _pallas_passthrough(keyframe: jnp.ndarray, frames: jnp.ndarray):
    """Single launch-overhead-only pallas_call: operands stay in HBM (pl.ANY)
    and the outputs are aliased onto the inputs, so no bytes move in-kernel."""
    return pl.pallas_call(
        _noop_alias_kernel,
        out_shape=(
            jax.ShapeDtypeStruct(keyframe.shape, keyframe.dtype),
            jax.ShapeDtypeStruct(frames.shape, frames.dtype),
        ),
        in_specs=[
            pl.BlockSpec(memory_space=pl.ANY),
            pl.BlockSpec(memory_space=pl.ANY),
        ],
        out_specs=(
            pl.BlockSpec(memory_space=pl.ANY),
            pl.BlockSpec(memory_space=pl.ANY),
        ),
        input_output_aliases={0: 0, 1: 1},
        cost_estimate=pl.CostEstimate(
            flops=0, transcendentals=0, bytes_accessed=0
        ),
    )(keyframe, frames)


class ReleVOModelPallas:
    """JAX/Pallas port of releVO_model.

    The module has no learnable parameters and its forward() does no tensor
    compute -- it only unpacks the input dict.
    """

    def __init__(self, checkpoint_location=None):
        # TODO(synk): checkpoint loading (torch.load file IO) in the reference
        # __init__ is skipped per the task (no file reads); there are no
        # parameters to load anyway.
        self.checkpoint_location = checkpoint_location

    def forward(self, data_dict, use_pallas=False):
        keyframe = data_dict["keyframe"]
        frames = data_dict["frames"]
        if use_pallas:
            # Optional Pallas path: no-op kernel with input->output aliasing;
            # zero bytes moved inside the kernel, launch-overhead-only.
            return _pallas_passthrough(keyframe, frames)
        # Highest-value optimization (perf review): the reference forward()
        # is a pure unpack, so return the inputs directly -- no copy at all.
        # TODO(synk): the reference forward() returns None; returning the
        # extracted tensors is a deliberate extension so callers get results.
        return keyframe, frames

    __call__ = forward


if __name__ == "__main__":
    key = jax.random.PRNGKey(0)
    k1, k2 = jax.random.split(key)

    B, T, C, H, W = 2, 4, 3, 16, 16
    keyframe = jax.random.normal(k1, (B, C, H, W), dtype=jnp.float32)
    frames = jax.random.normal(k2, (B, T, C, H, W), dtype=jnp.float32)

    model = ReleVOModelPallas()
    data_dict = {"keyframe": keyframe, "frames": frames}

    # Default (zero-overhead) path: pure unpack.
    kf_fast, fr_fast = model(data_dict)
    kf_fast = jax.block_until_ready(kf_fast)
    fr_fast = jax.block_until_ready(fr_fast)
    assert kf_fast.shape == keyframe.shape and kf_fast.dtype == keyframe.dtype
    assert fr_fast.shape == frames.shape and fr_fast.dtype == frames.dtype
    assert bool(jnp.all(kf_fast == keyframe))
    assert bool(jnp.all(fr_fast == frames))

    # Pallas path: no-op aliased kernel (exercises pallas_call on TPU).
    kf_out, fr_out = model(data_dict, use_pallas=True)
    kf_out = jax.block_until_ready(kf_out)
    fr_out = jax.block_until_ready(fr_out)
    assert kf_out.shape == keyframe.shape and kf_out.dtype == keyframe.dtype
    assert fr_out.shape == frames.shape and fr_out.dtype == frames.dtype
    assert bool(jnp.all(kf_out == keyframe))
    assert bool(jnp.all(fr_out == frames))

    print("KERNEL_OK")
</pallas_src>

<mosaic_0001>
module attributes {stable_mosaic.version = 11 : i64} {
  func.func @_noop_alias_kernel(%arg0: memref<2x3x16x16xf32, #tpu.memory_space<any>>, %arg1: memref<2x4x3x16x16xf32, #tpu.memory_space<any>>, %arg2: memref<2x3x16x16xf32, #tpu.memory_space<any>>, %arg3: memref<2x4x3x16x16xf32, #tpu.memory_space<any>>) attributes {dimension_semantics = [], scalar_prefetch = 0 : i64, scratch_operands = 0 : i64, tpu.core_type = #tpu.core_type<tc>} {
    return
  }
}

</mosaic_0001>

<bundles_post_ra>
// kernel: tpu_custom_call.1
= control target key start
LH: loop header
LB: loop body
LE: loop exit
PB: predicated region body
PF: predicated region fallthrough
CT: control target
= control target key end

     0   :  { %s29_s0 = inlined_call_operand.hbm [shape: f32[2,3,16,16], index: 0, kind: input, shape index: {}, may-alias: {0,2}]   ;;  %s30_s1 = inlined_call_operand.hbm [shape: f32[2,4,3,16,16], index: 1, kind: input, shape index: {}, may-alias: {1,3}]   ;;  %s31_s2 = inlined_call_operand.hbm [shape: f32[2,3,16,16], index: 2, kind: output, shape index: {0}, may-alias: {0,2}]   ;;  %s32_s3 = inlined_call_operand.hbm [shape: f32[2,4,3,16,16], index: 3, kind: output, shape index: {1}, may-alias: {1,3}]  }

</bundles_post_ra>
